<compile_context>
chip_gen: v7x
topology: tpu7x:2x2x1
jax: 0.10.0
libtpu: 0.0.40
codegen_flags: <defaults>
</compile_context>

<pallas_src>
import functools

import numpy as np
import jax
import jax.numpy as jnp
from jax import lax
from jax.experimental import pallas as pl
from jax.experimental.pallas import tpu as pltpu

# --- PW92 correlation parameters (A, alpha1, beta1, beta2, beta3, beta4) ---
_EC0 = (0.031091, 0.21370, 7.5957, 3.5876, 1.6382, 0.49294)   # paramagnetic ec(rs, 0)
_EC1 = (0.015545, 0.20548, 14.1189, 6.1977, 3.3662, 0.62517)  # ferromagnetic ec(rs, 1)
_MAC = (0.016887, 0.11125, 10.357, 3.6231, 0.88026, 0.49671)  # -alpha_c(rs)

_C_RS = 4.0 * np.pi / 3.0
_FDEN = 2.0 ** (4.0 / 3.0) - 2.0
_FDD0 = 8.0 / (9.0 * _FDEN)              # f''(0)
_INV_FDEN = 1.0 / _FDEN
_INV_FDD0 = 1.0 / _FDD0

_LANE = 128
_SUB = 8


def _cdiv(a, b):
    return -(-a // b)


def _recip(x):
    """Fast reciprocal: EUP approx + one Newton step (~full f32 precision)."""
    r = pl.reciprocal(x, approx=True)
    return r * (2.0 - x * r)


def _pw_G_q(q, q2, params):
    """PW92 G(rs) rewritten with q = rs^(1/2), rs = q^2 (denominator = polynomial in q)."""
    A, a1, b1, b2, b3, b4 = params
    den = (2.0 * A) * q * (b1 + q * (b2 + q * (b3 + q * b4)))
    return (-2.0 * A) * (1.0 + a1 * q2) * jnp.log(1.0 + _recip(den))


def _x43(x):
    """x ** (4/3) = x * exp(log(x)/3) -- one exp + one log on the EUP."""
    return x * jnp.exp(jnp.log(x) * (1.0 / 3.0))


def _lda_pw_kernel(n_ref, o_ref, *, npts, tiles_per_core):
    """Accumulate sum(n_tot * ec_PW92) of a (2, TR, 128) tile into the resident (8,128) output."""
    c = pl.program_id(0)   # core-split axis ("parallel")
    i = pl.program_id(1)   # reduction axis ("arbitrary")

    @pl.when(i == 0)
    def _():
        o_ref[...] = jnp.zeros_like(o_ref)

    tr = n_ref.shape[1]
    n_up = n_ref[0]                      # (TR, 128) f32
    n_dn = n_ref[1]

    n_tot = n_up + n_dn
    # q = (4*pi/3 * n_tot)^(-1/6);  rs = q^2, sqrt(rs) = q  (one exp + one log total)
    q = jnp.exp(jnp.log(_C_RS * n_tot) * (-1.0 / 6.0))
    q2 = q * q
    inv_n = _recip(n_tot)
    zeta = (n_up - n_dn) * inv_n

    ec0 = _pw_G_q(q, q2, _EC0)
    ec1 = _pw_G_q(q, q2, _EC1)
    mac = _pw_G_q(q, q2, _MAC)           # = -alpha_c

    # spin interpolation f(zeta); clamp for the fractional power at exactly +/-1
    zp = jnp.maximum(1.0 + zeta, 1e-30)
    zm = jnp.maximum(1.0 - zeta, 1e-30)
    f_zeta = (_x43(zp) + _x43(zm) - 2.0) * _INV_FDEN
    zeta2 = zeta * zeta
    zeta4 = zeta2 * zeta2

    ec = ec0 + f_zeta * ((ec1 - ec0) * zeta4 - mac * _INV_FDD0 * (1.0 - zeta4))
    contrib = n_tot * ec

    # mask padded / out-of-range grid points (handles ragged tails + phantom tiles in-kernel)
    tile_id = c * tiles_per_core + i
    row = lax.broadcasted_iota(jnp.int32, (tr, _LANE), 0)
    col = lax.broadcasted_iota(jnp.int32, (tr, _LANE), 1)
    gidx = (tile_id * tr + row) * _LANE + col
    contrib = jnp.where(gidx < npts, contrib, 0.0)

    # vreg-shaped partial sums: (TR,128) -> (TR/8, 8, 128) -> sum over whole vregs (pure VPU)
    o_ref[...] += contrib.reshape(tr // _SUB, _SUB, _LANE).sum(axis=0)


def spin_polarized_lda_energy(n, sigma=None, lap=None, tau=None,
                              requires_grad=False, scale_factor=1.0,
                              *, tile_rows=1024):
    """Pallas implementation of SpinPolarized.forward (returns the scalar energy).

    n: (2, *grid) spin densities (n[0]=up, n[1]=down), strictly positive.
    sigma / lap / tau: ignored (LDA).
    """
    del sigma, lap, tau
    # TODO(synk): requires_grad / E.backward() (gradient w.r.t. n) not implemented;
    # only the forward energy is computed here.
    assert n.shape[0] == 2
    n_flat = jnp.asarray(n, jnp.float32).reshape(2, -1)
    npts = n_flat.shape[1]

    quantum = _SUB * _LANE                       # 1024-point layout quantum
    pad = (-npts) % quantum
    if pad:
        # layout-only pad (value irrelevant: masked inside the kernel)
        n_flat = jnp.pad(n_flat, ((0, 0), (0, pad)), constant_values=1.0)
    rows = (npts + pad) // _LANE                 # multiple of 8
    n3 = n_flat.reshape(2, rows, _LANE)          # (spin, sublane-rows, 128 lanes)

    tr = max(_SUB, (min(int(tile_rows), rows) // _SUB) * _SUB)   # rows per tile (mult of 8)
    nb = _cdiv(rows, tr)                         # number of row tiles (last may be partial)
    ncores = 2                                   # megacore split; harmless on 1-TC chips
    spc = _cdiv(nb, ncores)                      # tiles per core

    def in_map(c, i):
        # clamp phantom tiles (tile_id >= nb) onto a valid block; they are fully masked
        return (0, jnp.minimum(c * spc + i, nb - 1), 0)

    kernel = functools.partial(_lda_pw_kernel, npts=npts, tiles_per_core=spc)

    cost = pl.CostEstimate(
        flops=60 * npts,
        transcendentals=13 * npts,
        bytes_accessed=8 * npts + ncores * _SUB * _LANE * 4,
    )

    partials = pl.pallas_call(
        kernel,
        out_shape=jax.ShapeDtypeStruct((ncores * _SUB, _LANE), jnp.float32),
        grid_spec=pltpu.PrefetchScalarGridSpec(
            num_scalar_prefetch=0,
            grid=(ncores, spc),
            in_specs=[pl.BlockSpec((2, tr, _LANE), in_map)],
            out_specs=pl.BlockSpec((_SUB, _LANE), lambda c, i: (c, 0)),
        ),
        compiler_params=pltpu.CompilerParams(
            dimension_semantics=("parallel", "arbitrary"),
            vmem_limit_bytes=32 * 1024 * 1024,
        ),
        cost_estimate=cost,
    )(n3)

    # tiny final reduction (2*8*128 partials) + scale
    return jnp.sum(partials) * jnp.float32(scale_factor)


def _reference_energy(n, scale_factor):
    """Pure-JAX reference using the straightforward (spec) formulation."""
    n_up = n[0].reshape(-1).astype(jnp.float32)
    n_dn = n[1].reshape(-1).astype(jnp.float32)
    n_tot = n_up + n_dn
    rs = (4.0 * np.pi / 3.0 * n_tot) ** (-1.0 / 3.0)
    rs_sqrt = jnp.sqrt(rs)
    zeta = (n_up - n_dn) / n_tot

    def G(params):
        A, a1, b1, b2, b3, b4 = params
        den = 2.0 * A * (b1 * rs_sqrt + b2 * rs + b3 * rs * rs_sqrt + b4 * rs * rs)
        return -2.0 * A * (1.0 + a1 * rs) * jnp.log(1.0 + 1.0 / den)

    ec0, ec1, mac = G(_EC0), G(_EC1), G(_MAC)
    f_zeta = ((1.0 + zeta) ** (4.0 / 3.0) + (1.0 - zeta) ** (4.0 / 3.0) - 2.0) / _FDEN
    zeta4 = zeta ** 4
    ec = ec0 - mac * (f_zeta / _FDD0) * (1.0 - zeta4) + (ec1 - ec0) * f_zeta * zeta4
    return jnp.sum(n_tot * ec) * scale_factor


if __name__ == "__main__":
    key = jax.random.PRNGKey(0)
    k_up, k_dn = jax.random.split(key)
    # small spin-polarized density on an 8x16x16 real-space grid (2048 points/spin)
    shape = (8, 16, 16)
    n_up = jax.random.uniform(k_up, shape, jnp.float32, 0.05, 1.0)
    n_dn = jax.random.uniform(k_dn, shape, jnp.float32, 0.05, 1.0)
    n = jnp.stack([n_up, n_dn], axis=0)            # (2, 8, 16, 16)
    sigma = jnp.zeros((3,) + shape, jnp.float32)   # unused by LDA
    lap = jnp.zeros((2,) + shape, jnp.float32)     # unused by LDA
    tau = jnp.zeros((2,) + shape, jnp.float32)     # unused by LDA
    scale_factor = 0.5

    E = spin_polarized_lda_energy(n, sigma, lap, tau,
                                  requires_grad=False, scale_factor=scale_factor)
    E = jax.block_until_ready(E)

    E_ref = jax.block_until_ready(_reference_energy(n, scale_factor))
    np.testing.assert_allclose(np.asarray(E), np.asarray(E_ref), rtol=1e-4, atol=1e-5)

    print("KERNEL_OK")
</pallas_src>

<mosaic_0001>
module attributes {stable_mosaic.version = 11 : i64} {
  func.func @_lda_pw_kernel(%arg0: i32, %arg1: i32, %arg2: memref<2x16x128xf32, #tpu.memory_space<vmem>>, %arg3: memref<8x128xf32, #tpu.memory_space<vmem>>) attributes {dimension_semantics = [#tpu.dimension_semantics<parallel>, #tpu.dimension_semantics<arbitrary>], iteration_bounds = array<i64: 2, 1>, scalar_prefetch = 0 : i64, scratch_operands = 0 : i64, tpu.core_type = #tpu.core_type<tc>, window_params = [{transform_indices = @transform_0, window_bounds = array<i64: 2, 16, 128>}, {transform_indices = @transform_1, window_bounds = array<i64: 8, 128>}]} {
    %c0_i32 = arith.constant 0 : i32
    %0 = arith.cmpi eq, %arg1, %c0_i32 : i32
    %1 = arith.extui %0 : i1 to i32
    %c0_i32_0 = arith.constant 0 : i32
    %2 = arith.cmpi ne, %1, %c0_i32_0 : i32
    scf.if %2 {
      %cst_53 = arith.constant 0.000000e+00 : f32
      %161 = vector.broadcast %cst_53 : f32 to vector<8x128xf32>
      %c0_54 = arith.constant 0 : index
      %c0_55 = arith.constant 0 : index
      %162 = vector.load %arg3[%c0_54, %c0_55] : memref<8x128xf32, #tpu.memory_space<vmem>>, vector<8x128xf32>
      tpu.vector_store %arg3[%c0_54, %c0_55], %161 {strides = array<i32>} : memref<8x128xf32, #tpu.memory_space<vmem>>, vector<8x128xf32>,
    } else {
    }
    %c0 = arith.constant 0 : index
    %c0_1 = arith.constant 0 : index
    %c0_2 = arith.constant 0 : index
    %3 = vector.load %arg2[%c0, %c0_1, %c0_2] : memref<2x16x128xf32, #tpu.memory_space<vmem>>, vector<1x16x128xf32>
    %4 = vector.shape_cast %3 : vector<1x16x128xf32> to vector<16x128xf32>
    %c1 = arith.constant 1 : index
    %c0_3 = arith.constant 0 : index
    %c0_4 = arith.constant 0 : index
    %5 = vector.load %arg2[%c1, %c0_3, %c0_4] : memref<2x16x128xf32, #tpu.memory_space<vmem>>, vector<1x16x128xf32>
    %6 = vector.shape_cast %5 : vector<1x16x128xf32> to vector<16x128xf32>
    %7 = arith.addf %4, %6 : vector<16x128xf32>
    %cst = arith.constant 4.18879032 : f32
    %8 = vector.broadcast %cst : f32 to vector<16x128xf32>
    %9 = arith.mulf %8, %7 : vector<16x128xf32>
    %10 = math.log %9 : vector<16x128xf32>
    %cst_5 = arith.constant -0.166666672 : f32
    %11 = vector.broadcast %cst_5 : f32 to vector<16x128xf32>
    %12 = arith.mulf %10, %11 : vector<16x128xf32>
    %13 = math.exp %12 : vector<16x128xf32>
    %14 = arith.mulf %13, %13 : vector<16x128xf32>
    %15 = tpu.reciprocal %7 {approx = true} : vector<16x128xf32> -> vector<16x128xf32>
    %16 = arith.mulf %7, %15 : vector<16x128xf32>
    %cst_6 = arith.constant 2.000000e+00 : f32
    %17 = vector.broadcast %cst_6 : f32 to vector<16x128xf32>
    %18 = arith.subf %17, %16 : vector<16x128xf32>
    %19 = arith.mulf %15, %18 : vector<16x128xf32>
    %20 = arith.subf %4, %6 : vector<16x128xf32>
    %21 = arith.mulf %20, %19 : vector<16x128xf32>
    %cst_7 = arith.constant 6.218200e-02 : f32
    %22 = vector.broadcast %cst_7 : f32 to vector<16x128xf32>
    %23 = arith.mulf %22, %13 : vector<16x128xf32>
    %cst_8 = arith.constant 4.929400e-01 : f32
    %24 = vector.broadcast %cst_8 : f32 to vector<16x128xf32>
    %25 = arith.mulf %13, %24 : vector<16x128xf32>
    %cst_9 = arith.constant 1.638200e+00 : f32
    %26 = vector.broadcast %cst_9 : f32 to vector<16x128xf32>
    %27 = arith.addf %26, %25 : vector<16x128xf32>
    %28 = arith.mulf %13, %27 : vector<16x128xf32>
    %cst_10 = arith.constant 3.587600e+00 : f32
    %29 = vector.broadcast %cst_10 : f32 to vector<16x128xf32>
    %30 = arith.addf %29, %28 : vector<16x128xf32>
    %31 = arith.mulf %13, %30 : vector<16x128xf32>
    %cst_11 = arith.constant 7.595700e+00 : f32
    %32 = vector.broadcast %cst_11 : f32 to vector<16x128xf32>
    %33 = arith.addf %32, %31 : vector<16x128xf32>
    %34 = arith.mulf %23, %33 : vector<16x128xf32>
    %cst_12 = arith.constant 2.137000e-01 : f32
    %35 = vector.broadcast %cst_12 : f32 to vector<16x128xf32>
    %36 = arith.mulf %35, %14 : vector<16x128xf32>
    %cst_13 = arith.constant 1.000000e+00 : f32
    %37 = vector.broadcast %cst_13 : f32 to vector<16x128xf32>
    %38 = arith.addf %37, %36 : vector<16x128xf32>
    %cst_14 = arith.constant -6.218200e-02 : f32
    %39 = vector.broadcast %cst_14 : f32 to vector<16x128xf32>
    %40 = arith.mulf %39, %38 : vector<16x128xf32>
    %41 = tpu.reciprocal %34 {approx = true} : vector<16x128xf32> -> vector<16x128xf32>
    %42 = arith.mulf %34, %41 : vector<16x128xf32>
    %cst_15 = arith.constant 2.000000e+00 : f32
    %43 = vector.broadcast %cst_15 : f32 to vector<16x128xf32>
    %44 = arith.subf %43, %42 : vector<16x128xf32>
    %45 = arith.mulf %41, %44 : vector<16x128xf32>
    %cst_16 = arith.constant 1.000000e+00 : f32
    %46 = vector.broadcast %cst_16 : f32 to vector<16x128xf32>
    %47 = arith.addf %46, %45 : vector<16x128xf32>
    %48 = math.log %47 : vector<16x128xf32>
    %49 = arith.mulf %40, %48 : vector<16x128xf32>
    %cst_17 = arith.constant 3.109000e-02 : f32
    %50 = vector.broadcast %cst_17 : f32 to vector<16x128xf32>
    %51 = arith.mulf %50, %13 : vector<16x128xf32>
    %cst_18 = arith.constant 6.251700e-01 : f32
    %52 = vector.broadcast %cst_18 : f32 to vector<16x128xf32>
    %53 = arith.mulf %13, %52 : vector<16x128xf32>
    %cst_19 = arith.constant 3.366200e+00 : f32
    %54 = vector.broadcast %cst_19 : f32 to vector<16x128xf32>
    %55 = arith.addf %54, %53 : vector<16x128xf32>
    %56 = arith.mulf %13, %55 : vector<16x128xf32>
    %cst_20 = arith.constant 6.197700e+00 : f32
    %57 = vector.broadcast %cst_20 : f32 to vector<16x128xf32>
    %58 = arith.addf %57, %56 : vector<16x128xf32>
    %59 = arith.mulf %13, %58 : vector<16x128xf32>
    %cst_21 = arith.constant 1.411890e+01 : f32
    %60 = vector.broadcast %cst_21 : f32 to vector<16x128xf32>
    %61 = arith.addf %60, %59 : vector<16x128xf32>
    %62 = arith.mulf %51, %61 : vector<16x128xf32>
    %cst_22 = arith.constant 2.054800e-01 : f32
    %63 = vector.broadcast %cst_22 : f32 to vector<16x128xf32>
    %64 = arith.mulf %63, %14 : vector<16x128xf32>
    %cst_23 = arith.constant 1.000000e+00 : f32
    %65 = vector.broadcast %cst_23 : f32 to vector<16x128xf32>
    %66 = arith.addf %65, %64 : vector<16x128xf32>
    %cst_24 = arith.constant -3.109000e-02 : f32
    %67 = vector.broadcast %cst_24 : f32 to vector<16x128xf32>
    %68 = arith.mulf %67, %66 : vector<16x128xf32>
    %69 = tpu.reciprocal %62 {approx = true} : vector<16x128xf32> -> vector<16x128xf32>
    %70 = arith.mulf %62, %69 : vector<16x128xf32>
    %cst_25 = arith.constant 2.000000e+00 : f32
    %71 = vector.broadcast %cst_25 : f32 to vector<16x128xf32>
    %72 = arith.subf %71, %70 : vector<16x128xf32>
    %73 = arith.mulf %69, %72 : vector<16x128xf32>
    %cst_26 = arith.constant 1.000000e+00 : f32
    %74 = vector.broadcast %cst_26 : f32 to vector<16x128xf32>
    %75 = arith.addf %74, %73 : vector<16x128xf32>
    %76 = math.log %75 : vector<16x128xf32>
    %77 = arith.mulf %68, %76 : vector<16x128xf32>
    %cst_27 = arith.constant 3.377400e-02 : f32
    %78 = vector.broadcast %cst_27 : f32 to vector<16x128xf32>
    %79 = arith.mulf %78, %13 : vector<16x128xf32>
    %cst_28 = arith.constant 4.967100e-01 : f32
    %80 = vector.broadcast %cst_28 : f32 to vector<16x128xf32>
    %81 = arith.mulf %13, %80 : vector<16x128xf32>
    %cst_29 = arith.constant 0.88025999 : f32
    %82 = vector.broadcast %cst_29 : f32 to vector<16x128xf32>
    %83 = arith.addf %82, %81 : vector<16x128xf32>
    %84 = arith.mulf %13, %83 : vector<16x128xf32>
    %cst_30 = arith.constant 3.623100e+00 : f32
    %85 = vector.broadcast %cst_30 : f32 to vector<16x128xf32>
    %86 = arith.addf %85, %84 : vector<16x128xf32>
    %87 = arith.mulf %13, %86 : vector<16x128xf32>
    %cst_31 = arith.constant 1.035700e+01 : f32
    %88 = vector.broadcast %cst_31 : f32 to vector<16x128xf32>
    %89 = arith.addf %88, %87 : vector<16x128xf32>
    %90 = arith.mulf %79, %89 : vector<16x128xf32>
    %cst_32 = arith.constant 1.112500e-01 : f32
    %91 = vector.broadcast %cst_32 : f32 to vector<16x128xf32>
    %92 = arith.mulf %91, %14 : vector<16x128xf32>
    %cst_33 = arith.constant 1.000000e+00 : f32
    %93 = vector.broadcast %cst_33 : f32 to vector<16x128xf32>
    %94 = arith.addf %93, %92 : vector<16x128xf32>
    %cst_34 = arith.constant -3.377400e-02 : f32
    %95 = vector.broadcast %cst_34 : f32 to vector<16x128xf32>
    %96 = arith.mulf %95, %94 : vector<16x128xf32>
    %97 = tpu.reciprocal %90 {approx = true} : vector<16x128xf32> -> vector<16x128xf32>
    %98 = arith.mulf %90, %97 : vector<16x128xf32>
    %cst_35 = arith.constant 2.000000e+00 : f32
    %99 = vector.broadcast %cst_35 : f32 to vector<16x128xf32>
    %100 = arith.subf %99, %98 : vector<16x128xf32>
    %101 = arith.mulf %97, %100 : vector<16x128xf32>
    %cst_36 = arith.constant 1.000000e+00 : f32
    %102 = vector.broadcast %cst_36 : f32 to vector<16x128xf32>
    %103 = arith.addf %102, %101 : vector<16x128xf32>
    %104 = math.log %103 : vector<16x128xf32>
    %105 = arith.mulf %96, %104 : vector<16x128xf32>
    %cst_37 = arith.constant 1.000000e+00 : f32
    %106 = vector.broadcast %cst_37 : f32 to vector<16x128xf32>
    %107 = arith.addf %106, %21 : vector<16x128xf32>
    %cst_38 = arith.constant 1.000000e-30 : f32
    %108 = vector.broadcast %cst_38 : f32 to vector<16x128xf32>
    %109 = arith.maximumf %107, %108 : vector<16x128xf32>
    %cst_39 = arith.constant 1.000000e+00 : f32
    %110 = vector.broadcast %cst_39 : f32 to vector<16x128xf32>
    %111 = arith.subf %110, %21 : vector<16x128xf32>
    %cst_40 = arith.constant 1.000000e-30 : f32
    %112 = vector.broadcast %cst_40 : f32 to vector<16x128xf32>
    %113 = arith.maximumf %111, %112 : vector<16x128xf32>
    %114 = math.log %109 : vector<16x128xf32>
    %cst_41 = arith.constant 0.333333343 : f32
    %115 = vector.broadcast %cst_41 : f32 to vector<16x128xf32>
    %116 = arith.mulf %114, %115 : vector<16x128xf32>
    %117 = math.exp %116 : vector<16x128xf32>
    %118 = arith.mulf %109, %117 : vector<16x128xf32>
    %119 = math.log %113 : vector<16x128xf32>
    %cst_42 = arith.constant 0.333333343 : f32
    %120 = vector.broadcast %cst_42 : f32 to vector<16x128xf32>
    %121 = arith.mulf %119, %120 : vector<16x128xf32>
    %122 = math.exp %121 : vector<16x128xf32>
    %123 = arith.mulf %113, %122 : vector<16x128xf32>
    %124 = arith.addf %118, %123 : vector<16x128xf32>
    %cst_43 = arith.constant 2.000000e+00 : f32
    %125 = vector.broadcast %cst_43 : f32 to vector<16x128xf32>
    %126 = arith.subf %124, %125 : vector<16x128xf32>
    %cst_44 = arith.constant 1.92366099 : f32
    %127 = vector.broadcast %cst_44 : f32 to vector<16x128xf32>
    %128 = arith.mulf %126, %127 : vector<16x128xf32>
    %129 = arith.mulf %21, %21 : vector<16x128xf32>
    %130 = arith.mulf %129, %129 : vector<16x128xf32>
    %131 = arith.subf %77, %49 : vector<16x128xf32>
    %132 = arith.mulf %131, %130 : vector<16x128xf32>
    %cst_45 = arith.constant 0.584822357 : f32
    %133 = vector.broadcast %cst_45 : f32 to vector<16x128xf32>
    %134 = arith.mulf %105, %133 : vector<16x128xf32>
    %cst_46 = arith.constant 1.000000e+00 : f32
    %135 = vector.broadcast %cst_46 : f32 to vector<16x128xf32>
    %136 = arith.subf %135, %130 : vector<16x128xf32>
    %137 = arith.mulf %134, %136 : vector<16x128xf32>
    %138 = arith.subf %132, %137 : vector<16x128xf32>
    %139 = arith.mulf %128, %138 : vector<16x128xf32>
    %140 = arith.addf %49, %139 : vector<16x128xf32>
    %141 = arith.mulf %7, %140 : vector<16x128xf32>
    %c1_i32 = arith.constant 1 : i32
    %142 = arith.muli %arg0, %c1_i32 : i32
    %143 = arith.addi %142, %arg1 : i32
    %144 = tpu.iota {dimensions = array<i32: 0>} : vector<16x128xi32>
    %145 = tpu.iota {dimensions = array<i32: 1>} : vector<16x128xi32>
    %c16_i32 = arith.constant 16 : i32
    %146 = arith.muli %143, %c16_i32 : i32
    %147 = vector.broadcast %146 : i32 to vector<16x128xi32>
    %148 = arith.addi %147, %144 : vector<16x128xi32>
    %c128_i32 = arith.constant 128 : i32
    %149 = vector.broadcast %c128_i32 : i32 to vector<16x128xi32>
    %150 = arith.muli %148, %149 : vector<16x128xi32>
    %151 = arith.addi %150, %145 : vector<16x128xi32>
    %c2048_i32 = arith.constant 2048 : i32
    %152 = vector.broadcast %c2048_i32 : i32 to vector<16x128xi32>
    %153 = arith.cmpi slt, %151, %152 : vector<16x128xi32>
    %cst_47 = arith.constant 0.000000e+00 : f32
    %154 = vector.broadcast %cst_47 : f32 to vector<16x128xf32>
    %155 = arith.select %153, %141, %154 : vector<16x128xi1>, vector<16x128xf32>
    %c0_48 = arith.constant 0 : index
    %c0_49 = arith.constant 0 : index
    %156 = vector.load %arg3[%c0_48, %c0_49] : memref<8x128xf32, #tpu.memory_space<vmem>>, vector<8x128xf32>
    %157 = vector.shape_cast %155 : vector<16x128xf32> to vector<2x8x128xf32>
    %cst_50 = arith.constant dense<0.000000e+00> : vector<8x128xf32>
    %158 = vector.multi_reduction <add>, %157, %cst_50 [0] : vector<2x8x128xf32> to vector<8x128xf32>
    %159 = arith.addf %156, %158 : vector<8x128xf32>
    %c0_51 = arith.constant 0 : index
    %c0_52 = arith.constant 0 : index
    %160 = vector.load %arg3[%c0_51, %c0_52] : memref<8x128xf32, #tpu.memory_space<vmem>>, vector<8x128xf32>
    tpu.vector_store %arg3[%c0_51, %c0_52], %159 {strides = array<i32>} : memref<8x128xf32, #tpu.memory_space<vmem>>, vector<8x128xf32>,
    return
  }
  func.func @transform_0(%arg0: i32, %arg1: i32) -> (i32, i32, i32) {
    %c1_i32 = arith.constant 1 : i32
    %0 = arith.muli %arg0, %c1_i32 : i32
    %1 = arith.addi %0, %arg1 : i32
    %c0_i32 = arith.constant 0 : i32
    %2 = arith.minsi %1, %c0_i32 : i32
    %c0_i32_0 = arith.constant 0 : i32
    %c0_i32_1 = arith.constant 0 : i32
    %c0_i32_2 = arith.constant 0 : i32
    return %c0_i32_0, %2, %c0_i32_1 : i32, i32, i32
  }
  func.func @transform_1(%arg0: i32, %arg1: i32) -> (i32, i32) {
    %c0_i32 = arith.constant 0 : i32
    %c0_i32_0 = arith.constant 0 : i32
    return %arg0, %c0_i32 : i32, i32
  }
}

</mosaic_0001>

<bundles_post_ra>
// kernel: tpu_custom_call.1
= control target key start
LH: loop header
LB: loop body
LE: loop exit
PB: predicated region body
PF: predicated region fallthrough
CT: control target
= control target key end

     0   :  { %6 = vsyncpa [#allocation3], 0  ;;  %s1038_s0 = inlined_call_operand.hbm [shape: f32[2,16,128], index: 0, kind: input, shape index: {}]   ;;  %s1039_s1 = inlined_call_operand.hbm [shape: f32[16,128], index: 1, kind: output, shape index: {}]  }
   0x1   :  { %8 = vsyncpa [#allocation3 + $0x1], 0 }
   0x2   :  { %9 = vsyncpa [#allocation4], 0 }
   0x3   :  { %11 = vsyncpa [#allocation4 + $0x1], 0  ;;  %s796_s6 = smov 0   ;;  %s798_s7 = smov 0  }
   0x4   :  { %s800_s8 = smov 0   ;;  %s802_s9 = smov 0  }
   0x5   :  { %s804_s10 = smov 0   ;;  %s806_s11 = smov 0  }
   0x6   :  { %s808_s12 = smov 0   ;;  %s810_s13 = smov 0  }
   0x7 LB: > { %s486_s14 = sadd.s32 4294967295, %s780_s13   ;;  %s487_s15 = sadd.s32 4294967294, %s780_s13   ;;  %s780_s13 = sphi %s810_s13, %s17_s13   ;;  %s776_s12 = sphi %s808_s12, %s1058_s12   ;;  %s772_s11 = sphi %s806_s11, %s1057_s11   ;;  %s768_s10 = sphi %s804_s10, %s1028_s10   ;;  %s764_s9 = sphi %s802_s9, %s1056_s9   ;;  %s760_s8 = sphi %s800_s8, %s1055_s8   ;;  %s756_s7 = sphi %s798_s7, %s1054_s7   ;;  %s752_s6 = sphi %s796_s6, %s1053_s6  }
   0x8   : > { %s29_s16 = sadd.s32 1, %s776_s12  ;;  %p749_p1 = scmp.ne.s32.totalorder %s768_s10, 0 }
   0x9   : > { %p31_p0 = scmp.ge.s32.totalorder %s29_s16, 2  ;;  %p50_p2 = scmp.eq.s32.totalorder %s780_s13, 0 }
   0xa   : > { %p55_p3 = scmp.ne.s32.totalorder %s768_s10, %s764_s9  ;;  %p56_p5 = scmp.eq.s32.totalorder %s486_s14, 0 }
   0xb   : > { %s1060_s16 = smov (%p31_p0, %s29_s16), 0  ;;  %p842_p4 = por %p749_p1, %p50_p2 }
   0xc   : > { %p846_p6 = por %p56_p5, %p55_p3  ;;  %s65_s19 = ssub.s32 %s776_s12, %s1060_s16 }
   0xd   : > { %p66_p7 = scmp.eq.s32.totalorder %s65_s19, 0  ;;  %s68_s20 = sadd.s32 1, %s760_s8 }
   0xe   : > { %s1044_s18 = scalar_select %p846_p6, 1, 0 }
   0xf   : > { %s854_s21 = scalar_select %p66_p7, %s760_s8, %s68_s20  }
  0x10   : > { %p78_p8 = scmp.ne.s32.totalorder %s760_s8, %s756_s7  ;;  %p79_p9 = scmp.eq.s32.totalorder %s486_s14, 1 }
  0x11   : > { %p84_p10 = scmp.ne.s32.totalorder %s756_s7, %s752_s6  ;;  %p85_p11 = scmp.eq.s32.totalorder %s487_s15, 1 }
  0x12   : > { %p860_p12 = por %p79_p9, %p78_p8  ;;  %p518_p1 = scmp.lt.s32.totalorder %s780_s13, 2 }
  0x13   : > { %p865_p0 = por %p85_p11, %p84_p10  ;;  %s782_s24 = smov [#allocation2]  }
  0x14   : > { %s1045_s22 = scalar_select %p860_p12, 1, 0 }
  0x15   : > { %s1046_s23 = scalar_select %p865_p0, 1, 0 }
  0x16   : > { %s119_s25 = sshll.u32 %s782_s24, 4  ;;  %p872_p2 = pnand %p518_p1, %p842_p4  ;;  %s120_s25 = int_to_ptr.vmem [resolvable:$true] %s119_s25 }
  0x17   : > { %s647_s29 = scalar_lea.hbm %s1038_s0, 512 }
  0x18   : > { %s1047_s26 = scalar_select %p872_p2, 1, 0 }
  0x19   : > { %p648_p3 = scmp.ne.s32.totalorder %s1038_s0, %s647_s29  ;;  %p649_p5 = pneg %p872_p2 }
  0x1a   : > { %p654_p9 = scmp.lt.u32.totalorder %s647_s29, %s647_s29  ;;  %p656_p4 = scmp.lt.u32.totalorder %s647_s29, %s1038_s0 }
  0x1b   : > { %p650_p7 = pnand %p649_p5, %p648_p3 }
  0x1c   : > { %p657_p10 = por %p656_p4, %p654_p9 }
  0x1d   : > { %p651_p8 = pneg %p650_p7 }
  0x1f   : > { %p658_p11 = pnand %p657_p10, %p651_p8 }
  0x21   : > { %661 = shalt.err (!%p658_p11)
}
  0x22   : > { %s662_s5 = scalar_lea.vmem %s120_s25, 512  ;;  %s669_s9 = scalar_lea.vmem %s120_s25, 1024 }
  0x23   : > { %p663_p1 = scmp.ne.s32.totalorder %s120_s25, %s662_s5  ;;  %p670_p12 = scmp.lt.s32.totalorder %s120_s25, %s120_s25 }
  0x24   : > { %p671_p6 = scmp.lt.s32.totalorder %s669_s9, %s662_s5 }
  0x25   : > { %p665_p13 = pnand %p663_p1, %p649_p5 }
  0x26   : > { %p672_p2 = por %p671_p6, %p670_p12 }
  0x27   : > { %p666_p0 = pneg %p665_p13 }
  0x29   : > { %p673_p3 = pnand %p672_p2, %p666_p0 }
  0x2b   : > { %676 = shalt.err (!%p673_p3)
}
  0x2c   : > { %s783_s14 = smov 128   ;;  %s784_s15 = smov 8  }
  0x2d   : > { %p1048_p7 = scmp.ne.s32.totalorder %s1047_s26, 0  ;;  %p493_p8 = scmp.ge.s32.totalorder %s780_s13, 1 }
  0x2e   : > { %p127_p9 = scmp.lt.s32.totalorder %s780_s13, 3 }
  0x2f   : > { %513 = dma.hbm_to_vmem [thread:$0]  (!%p1048_p7), %s1038_s0, 512, %s120_s25, [#allocation3], %s783_s14, %s783_s14, %s784_s15  }
  0x30   : > { %p128_p5 = pnand %p493_p8, %p127_p9 }
  0x31   : > { %s133_s20 = sand.u32 (!%p128_p5), 1, %s768_s10   ;;  %p1049_p6 = scmp.ne.s32.totalorder (!%p128_p5), %s1044_s18, 0 }
  0x32   : > { %131 = sbr.rel (%p128_p5) target bundleno = 174 (0xae), region = 24  ;;  %s494_s24 = sshll.u32 (!%p128_p5), %s133_s20, 5 }
  0x33   : > { %s134_s27 = scalar_lea.sflag (!%p128_p5), [#allocation3], %s133_s20  ;;  %s137_s28 = scalar_lea.vmem (!%p128_p5), [#allocation2], %s494_s24 }
  0x39   : > { %742 = dma.done.wait (%p1049_p6), %s134_s27, 512  }
  0x3a   : > { %744 = vsyncadd (%p1049_p6), %s134_s27, 4294966784  ;;  %v165_v0 = vld [vmem:[%s137_s28] sm:$0xff]  ;;  %v166_v1 = vld [vmem:[%s137_s28 + $0x8] sm:$0xff]  ;;  %s500_s18 = sshll.u32 %s772_s11, 4  ;;  %s153_s25 = sand.u32 1, %s756_s7  }
  0x3b   : > { %v496_v2 = vld [vmem:[%s137_s28 + $0x10] sm:$0xff]  ;;  %v497_v3 = vld [vmem:[%s137_s28 + $0x18] sm:$0xff]  ;;  %s495_s26 = sshll.u32 %s153_s25, 3  ;;  %s502_s29 = sshll.u32 %s772_s11, 7 }
  0x3c   : > { %v899_v4 = vadd.f32 %v496_v2, %v165_v0  ;;  %v901_v5 = vadd.f32 %v497_v3, %v166_v1  ;;  %v194_v23 = vsub.f32 %v165_v0, %v496_v2  ;;  %v195_v25 = vsub.f32 %v166_v1, %v497_v3  ;;  %s155_s30 = scalar_lea.vmem [#allocation5], %s495_s26  ;;  %s985_s5 = scalar_lea.hbm %s1039_s1, %s502_s29 }
  0x3d   : > { %s408_s2 = sshll.u32 %s155_s30, 4  ;;  %s395_s9 = scalar_lea.sflag [#allocation4], %s153_s25  ;;  %s987_s2 = int_to_ptr.vmem [resolvable:$true] %s408_s2 }
  0x3e   : > { %v172_v6 = vmul.f32 4.1887903, %v899_v4  ;;  %595 = vrcp.f32 %v899_v4  ;;  %v173_v7 = vmul.f32 4.1887903, %v901_v5  ;;  %s677_s14 = scalar_lea.vmem %s987_s2, 128  ;;  %p1050_p13 = scmp.ne.s32.totalorder %s1045_s22, 0 }
  0x3f   : > { %597 = vrcp.f32 %v901_v5  ;;  %p678_p12 = scmp.ne.s32.totalorder %s987_s2, %s677_s14  ;;  %s785_s11 = smov [#allocation5]  }
  0x40   : > { %599 = vlog2.f32 %v172_v6  ;;  %s681_s15 = sshll.u32 %s785_s11, 4  ;;  %s682_s15 = int_to_ptr.vmem [resolvable:$false] %s681_s15 }
  0x41   : > { %601 = vlog2.f32 %v173_v7  ;;  %p679_p0 = pnand %p678_p12, %p1050_p13  ;;  %s683_s17 = scalar_lea.vmem %s682_s15, 256 }
  0x42   : > { %p684_p4 = scmp.lt.s32.totalorder %s987_s2, %s682_s15  ;;  %p685_p10 = scmp.lt.s32.totalorder %s683_s17, %s677_s14 }
  0x43   : > { %p680_p2 = pneg %p679_p0 }
  0x44   : > { %p686_p11 = por %p685_p10, %p684_p4 }
  0x46   : > { %p687_p1 = pnand %p686_p11, %p680_p2 }
  0x48   : > { %v596_v8 = vpop.eup %595 }
  0x49   : > { %v598_v9 = vpop.eup %597  ;;  %v188_v10 = vmul.f32 %v596_v8, %v899_v4 }
  0x4a   : > { %v600_v11 = vpop.eup %599  ;;  %v189_v12 = vmul.f32 %v598_v9, %v901_v5 }
  0x4b   : > { %v602_v13 = vpop.eup %601  ;;  %v175_v14 = vmul.f32 0.6931472, %v600_v11  ;;  %v190_v16 = vsub.f32 2.0, %v188_v10 }
  0x4c   : > { %v177_v15 = vmul.f32 0.6931472, %v602_v13  ;;  %v191_v18 = vsub.f32 2.0, %v189_v12 }
  0x4d   : > { %v178_v17 = vmul.f32 -0.16666667, %v175_v14  ;;  %v192_v22 = vmul.f32 %v596_v8, %v190_v16 }
  0x4e   : > { %v179_v19 = vmul.f32 -0.16666667, %v177_v15  ;;  %v193_v24 = vmul.f32 %v598_v9, %v191_v18 }
  0x4f   : > { %v180_v20 = vmul.f32 1.442695, %v178_v17  ;;  %v909_v26 = vmul.f32 %v194_v23, %v192_v22 }
  0x50   : > { %v182_v21 = vmul.f32 1.442695, %v179_v19  ;;  %v911_v27 = vmul.f32 %v195_v25, %v193_v24 }
  0x51   : > { %603 = vpow2.f32 %v180_v20  ;;  %v914_v28 = vadd.f32 1.0, %v909_v26  ;;  %v316_v30 = vsub.f32 1.0, %v909_v26 }
  0x52   : > { %605 = vpow2.f32 %v182_v21  ;;  %v917_v29 = vadd.f32 1.0, %v911_v27  ;;  %v317_v32 = vsub.f32 1.0, %v911_v27 }
  0x53   : > { %v314_v35 = vmax.f32 %v914_v28, 1e-30  ;;  %v930_v40 = vmax.f32 %v316_v30, 1e-30 }
  0x54   : > { %v315_v37 = vmax.f32 %v917_v29, 1e-30  ;;  %v933_v43 = vmax.f32 %v317_v32, 1e-30 }
  0x55   : > { %607 = vlog2.f32 %v314_v35 }
  0x56   : > { %609 = vlog2.f32 %v315_v37 }
  0x57   : > { %611 = vlog2.f32 %v930_v40 }
  0x58   : > { %613 = vlog2.f32 %v933_v43 }
  0x5b   : > { %v920_v31 = vpop.eup %603 }
  0x5c   : > { %v923_v33 = vpop.eup %605  ;;  %v200_v34 = vmul.f32 0.49294, %v920_v31  ;;  %v238_v39 = vmul.f32 0.62517, %v920_v31  ;;  %v198_v52 = vmul.f32 0.062182, %v920_v31 }
  0x5d   : > { %v201_v36 = vmul.f32 0.49294, %v923_v33  ;;  %v239_v42 = vmul.f32 0.62517, %v923_v33  ;;  %v199_v55 = vmul.f32 0.062182, %v923_v33 }
  0x5e   : > { %v202_v38 = vadd.f32 1.6382, %v200_v34  ;;  %v240_v45 = vadd.f32 3.3662, %v238_v39  ;;  %v236_v57 = vmul.f32 0.03109, %v920_v31 }
  0x5f   : > { %v203_v41 = vadd.f32 1.6382, %v201_v36  ;;  %v241_v47 = vadd.f32 3.3662, %v239_v42  ;;  %v276_v61 = vmul.f32 0.49671, %v920_v31  ;;  %v608_v10 = vpop.eup %607 }
  0x60   : > { %v204_v44 = vmul.f32 %v920_v31, %v202_v38  ;;  %v242_v49 = vmul.f32 %v920_v31, %v240_v45  ;;  %v277_v62 = vmul.f32 0.49671, %v923_v33  ;;  %v237_v0 = vmul.f32 0.03109, %v923_v33  ;;  %v610_v14 = vpop.eup %609 }
  0x61   : > { %v205_v46 = vmul.f32 %v923_v33, %v203_v41  ;;  %v243_v51 = vmul.f32 %v923_v33, %v241_v47  ;;  %v278_v6 = vadd.f32 0.88026, %v276_v61  ;;  %v612_v16 = vpop.eup %611  ;;  %v274_v20 = vmul.f32 0.033774, %v920_v31 }
  0x62   : > { %v206_v48 = vadd.f32 3.5876, %v204_v44  ;;  %v244_v54 = vadd.f32 6.1977, %v242_v49  ;;  %v279_v7 = vadd.f32 0.88026, %v277_v62  ;;  %v614_v19 = vpop.eup %613 }
  0x63   : > { %v207_v50 = vadd.f32 3.5876, %v205_v46  ;;  %v245_v58 = vadd.f32 6.1977, %v243_v51  ;;  %v280_v12 = vmul.f32 %v920_v31, %v278_v6  ;;  %v321_v21 = vmul.f32 0.6931472, %v608_v10 }
  0x64   : > { %v208_v53 = vmul.f32 %v920_v31, %v206_v48  ;;  %v246_v60 = vmul.f32 %v920_v31, %v244_v54  ;;  %v281_v13 = vmul.f32 %v923_v33, %v279_v7  ;;  %v275_v22 = vmul.f32 0.033774, %v923_v33 }
  0x65   : > { %v209_v56 = vmul.f32 %v923_v33, %v207_v50  ;;  %v247_v1 = vmul.f32 %v923_v33, %v245_v58  ;;  %v282_v17 = vadd.f32 3.6231, %v280_v12  ;;  %v323_v25 = vmul.f32 0.6931472, %v610_v14 }
  0x66   : > { %v210_v59 = vadd.f32 7.5957, %v208_v53  ;;  %v248_v3 = vadd.f32 14.1189, %v246_v60  ;;  %v283_v18 = vadd.f32 3.6231, %v281_v13  ;;  %v184_v6 = vmul.f32 %v920_v31, %v920_v31 }
  0x67   : > { %v211_v63 = vadd.f32 7.5957, %v209_v56  ;;  %v249_v9 = vadd.f32 14.1189, %v247_v1  ;;  %v284_v23 = vmul.f32 %v920_v31, %v282_v17  ;;  %v333_v30 = vmul.f32 0.6931472, %v612_v16 }
  0x68   : > { %v212_v2 = vmul.f32 %v210_v59, %v198_v52  ;;  %v250_v11 = vmul.f32 %v248_v3, %v236_v57  ;;  %v285_v24 = vmul.f32 %v923_v33, %v283_v18  ;;  %v335_v36 = vmul.f32 0.6931472, %v614_v19 }
  0x69   : > { %v213_v8 = vmul.f32 %v211_v63, %v199_v55  ;;  %v251_v15 = vmul.f32 %v249_v9, %v237_v0  ;;  %v286_v32 = vadd.f32 10.357, %v284_v23  ;;  %v324_v38 = vmul.f32 0.33333334, %v321_v21 }
  0x6a   : > { %615 = vrcp.f32 %v212_v2  ;;  %v287_v34 = vadd.f32 10.357, %v285_v24  ;;  %v325_v42 = vmul.f32 0.33333334, %v323_v25  ;;  %v336_v44 = vmul.f32 0.33333334, %v333_v30 }
  0x6b   : > { %617 = vrcp.f32 %v213_v8  ;;  %v288_v39 = vmul.f32 %v286_v32, %v274_v20  ;;  %v337_v46 = vmul.f32 0.33333334, %v335_v36  ;;  %v326_v49 = vmul.f32 1.442695, %v324_v38 }
  0x6c   : > { %619 = vrcp.f32 %v250_v11  ;;  %v289_v41 = vmul.f32 %v287_v34, %v275_v22  ;;  %v328_v52 = vmul.f32 1.442695, %v325_v42  ;;  %v338_v56 = vmul.f32 1.442695, %v336_v44 }
  0x6d   : > { %621 = vrcp.f32 %v251_v15  ;;  %v340_v59 = vmul.f32 1.442695, %v337_v46  ;;  %v185_v7 = vmul.f32 %v923_v33, %v923_v33  ;;  %v214_v14 = vmul.f32 0.2137, %v184_v6 }
  0x6e   : > { %623 = vrcp.f32 %v288_v39  ;;  %v252_v17 = vmul.f32 0.20548, %v184_v6  ;;  %v373_v22 = vlaneseq  ;;  %v290_v42 = vmul.f32 0.11125, %v184_v6 }
  0x6f   : > { %625 = vrcp.f32 %v289_v41  ;;  %v253_v31 = vmul.f32 0.20548, %v185_v7  ;;  %v216_v24 = vadd.f32 1.0, %v214_v14 }
  0x70   : > { %627 = vpow2.f32 %v326_v49  ;;  %v254_v34 = vadd.f32 1.0, %v252_v17  ;;  %v374_v44 = vshrl.u32 %v373_v22, 7 }
  0x71   : > { %629 = vpow2.f32 %v328_v52  ;;  %v218_v46 = vmul.f32 -0.062182, %v216_v24 }
  0x72   : > { %631 = vpow2.f32 %v338_v56  ;;  %v292_v56 = vadd.f32 1.0, %v290_v42 }
  0x73   : > { %633 = vpow2.f32 %v340_v59  ;;  %v350_v59 = vmul.f32 %v909_v26, %v909_v26 }
  0x74   : > { %v616_v45 = vpop.eup %615 }
  0x75   : > { %v618_v47 = vpop.eup %617  ;;  %v222_v48 = vmul.f32 %v616_v45, %v212_v2  ;;  %v352_v6 = vmul.f32 %v350_v59, %v350_v59 }
  0x76   : > { %v620_v50 = vpop.eup %619  ;;  %v223_v51 = vmul.f32 %v618_v47, %v213_v8 }
  0x77   : > { %v622_v53 = vpop.eup %621  ;;  %v224_v54 = vsub.f32 2.0, %v222_v48  ;;  %v260_v55 = vmul.f32 %v620_v50, %v250_v11  ;;  %v291_v48 = vmul.f32 0.11125, %v185_v7 }
  0x78   : > { %v225_v57 = vsub.f32 2.0, %v223_v51  ;;  %v261_v58 = vmul.f32 %v622_v53, %v251_v15  ;;  %v624_v9 = vpop.eup %623  ;;  %v215_v15 = vmul.f32 0.2137, %v185_v7  ;;  %v256_v51 = vmul.f32 -0.03109, %v254_v34 }
  0x79   : > { %v226_v60 = vmul.f32 %v616_v45, %v224_v54  ;;  %v262_v61 = vsub.f32 2.0, %v260_v55  ;;  %v626_v11 = vpop.eup %625  ;;  %v298_v12 = vmul.f32 %v624_v9, %v288_v39  ;;  %v255_v39 = vadd.f32 1.0, %v253_v31 }
  0x7a   : > { %v227_v62 = vmul.f32 %v618_v47, %v225_v57  ;;  %v263_v63 = vsub.f32 2.0, %v261_v58  ;;  %v299_v13 = vmul.f32 %v626_v11, %v289_v41  ;;  %v628_v19 = vpop.eup %627  ;;  %v217_v25 = vadd.f32 1.0, %v215_v15 }
  0x7b   : > { %v228_v0 = vadd.f32 1.0, %v226_v60  ;;  %v264_v1 = vmul.f32 %v620_v50, %v262_v61  ;;  %v300_v16 = vsub.f32 2.0, %v298_v12  ;;  %v630_v21 = vpop.eup %629  ;;  %v257_v54 = vmul.f32 -0.03109, %v255_v39 }
  0x7c   : > { %v229_v2 = vadd.f32 1.0, %v227_v62  ;;  %v265_v3 = vmul.f32 %v622_v53, %v263_v63  ;;  %v301_v18 = vsub.f32 2.0, %v299_v13  ;;  %v632_v23 = vpop.eup %631  ;;  %v219_v47 = vmul.f32 -0.062182, %v217_v25 }
  0x7d   : > { %635 = vlog2.f32 %v228_v0  ;;  %v266_v8 = vadd.f32 1.0, %v264_v1  ;;  %v302_v20 = vmul.f32 %v624_v9, %v300_v16  ;;  %v634_v32 = vpop.eup %633  ;;  %v330_v57 = vmul.f32 %v628_v19, %v314_v35 }
  0x7e   : > { %637 = vlog2.f32 %v229_v2  ;;  %v267_v10 = vadd.f32 1.0, %v265_v3  ;;  %v303_v33 = vmul.f32 %v626_v11, %v301_v18  ;;  %v342_v58 = vmul.f32 %v632_v23, %v930_v40 }
  0x7f   : > { %639 = vlog2.f32 %v266_v8  ;;  %v304_v30 = vadd.f32 1.0, %v302_v20  ;;  %v293_v60 = vadd.f32 1.0, %v291_v48  ;;  %v331_v61 = vmul.f32 %v630_v21, %v315_v37 }
  0x80   : > { %641 = vlog2.f32 %v267_v10  ;;  %v305_v36 = vadd.f32 1.0, %v303_v33  ;;  %v343_v62 = vmul.f32 %v634_v32, %v933_v43  ;;  %v351_v63 = vmul.f32 %v911_v27, %v911_v27 }
  0x81   : > { %643 = vlog2.f32 %v304_v30  ;;  %v379_v35 = vstv %s500_s18  ;;  %v294_v3 = vmul.f32 -0.033774, %v292_v56  ;;  %v344_v40 = vadd.f32 %v342_v58, %v330_v57 }
  0x82   : > { %645 = vlog2.f32 %v305_v36  ;;  %v375_v7 = vadd.s32 8, %v374_v44  ;;  %v295_v8 = vmul.f32 -0.033774, %v293_v60  ;;  %v345_v9 = vadd.f32 %v343_v62, %v331_v61 }
  0x83   : > { %v353_v10 = vmul.f32 %v351_v63, %v351_v63  ;;  %v380_v13 = vadd.s32 %v379_v35, %v374_v44  ;;  %v498_v14 = vadd.f32 -2.0, %v344_v40  ;;  %v360_v15 = vsub.f32 1.0, %v352_v6 }
  0x84   : > { %v381_v16 = vadd.s32 %v379_v35, %v375_v7  ;;  %v499_v18 = vadd.f32 -2.0, %v345_v9  ;;  %v377_v23 = vand.u32 127, %v373_v22 }
  0x85   : > { %v361_v19 = vsub.f32 1.0, %v353_v10  ;;  %v382_v24 = vmul.u32 128, %v380_v13  ;;  %v348_v25 = vmul.f32 1.923661, %v498_v14 }
  0x86   : > { %v383_v32 = vmul.u32 128, %v381_v16  ;;  %v349_v34 = vmul.f32 1.923661, %v499_v18 }
  0x87   : > { %v636_v38 = vpop.eup %635 }
  0x88   : > { %v638_v41 = vpop.eup %637  ;;  %v231_v50 = vmul.f32 0.6931472, %v636_v38  ;;  %v385_v44 = vadd.s32 %v383_v32, %v377_v23 }
  0x89   : > { %v640_v45 = vpop.eup %639  ;;  %v233_v53 = vmul.f32 0.6931472, %v638_v41  ;;  %v384_v41 = vadd.s32 %v382_v24, %v377_v23 }
  0x8a   : > { %v642_v49 = vpop.eup %641  ;;  %v269_v52 = vmul.f32 0.6931472, %v640_v45  ;;  %v234_v0 = vmul.f32 %v231_v50, %v218_v46  ;;  %vm387_vm1 = vcmp.lt.s32.totalorder %v385_v44, 2048 }
  0x8b   : > { %v271_v55 = vmul.f32 0.6931472, %v642_v49  ;;  %v235_v2 = vmul.f32 %v233_v53, %v219_v47  ;;  %v644_v26 = vpop.eup %643  ;;  %vm386_vm0 = vcmp.lt.s32.totalorder %v384_v41, 2048 }
  0x8c   : > { %v272_v1 = vmul.f32 %v269_v52, %v256_v51  ;;  %v646_v29 = vpop.eup %645  ;;  %v307_v37 = vmul.f32 0.6931472, %v644_v26 }
  0x8d   : > { %v273_v28 = vmul.f32 %v271_v55, %v257_v54  ;;  %v309_v43 = vmul.f32 0.6931472, %v646_v29 }
  0x8e   : > { %v354_v11 = vsub.f32 %v272_v1, %v234_v0  ;;  %v310_v27 = vmul.f32 %v307_v37, %v294_v3 }
  0x8f   : > { %v355_v12 = vsub.f32 %v273_v28, %v235_v2  ;;  %v311_v17 = vmul.f32 %v309_v43, %v295_v8 }
  0x90   : > { %v356_v31 = vmul.f32 %v354_v11, %v352_v6  ;;  %v358_v20 = vmul.f32 0.58482236, %v310_v27 }
  0x91   : > { %v357_v21 = vmul.f32 %v355_v12, %v353_v10  ;;  %v359_v33 = vmul.f32 0.58482236, %v311_v17 }
  0x92   : > { %v362_v30 = vmul.f32 %v360_v15, %v358_v20 }
  0x93   : > { %v363_v36 = vmul.f32 %v361_v19, %v359_v33 }
  0x94   : > { %v364_v38 = vsub.f32 %v356_v31, %v362_v30 }
  0x95   : > { %v365_v39 = vsub.f32 %v357_v21, %v363_v36 }
  0x96   : > { %v366_v42 = vmul.f32 %v364_v38, %v348_v25 }
  0x97   : > { %v367_v45 = vmul.f32 %v365_v39, %v349_v34 }
  0x98   : > { %v368_v46 = vadd.f32 %v366_v42, %v234_v0 }
  0x99   : > { %v369_v47 = vadd.f32 %v367_v45, %v235_v2 }
  0x9a   : > { %v370_v22 = vmul.f32 %v368_v46, %v899_v4 }
  0x9b   : > { %v371_v48 = vmul.f32 %v369_v47, %v901_v5 }
  0x9c   : > { %v388_v49 = vsel %vm386_vm0, %v370_v22, 0.0 }
  0x9d   : > { %v389_v50 = vsel %vm387_vm1, %v371_v48, 0.0 }
  0x9e   : > { %v391_v51 = vadd.f32 %v389_v50, %v388_v49 }
  0xa0   : > { %393 = vst [vmem:[%s155_s30] sm:$0xff] %v391_v51 }
  0xa1   : > { %690 = shalt.err (!%p687_p1)
}
  0xa2   : > { %s691_s19 = scalar_lea.hbm %s985_s5, 128  ;;  %s695_s27 = scalar_lea.hbm %s1039_s1, 256 }
  0xa3   : > { %p692_p3 = scmp.ne.s32.totalorder %s985_s5, %s691_s19  ;;  %p696_p9 = scmp.lt.u32.totalorder %s985_s5, %s1039_s1 }
  0xa4   : > { %p697_p5 = scmp.lt.u32.totalorder %s695_s27, %s691_s19  ;;  %p699_p12 = scmp.lt.u32.totalorder %s691_s19, %s985_s5 }
  0xa5   : > { %p693_p7 = pnand %p692_p3, %p1050_p13 }
  0xa6   : > { %p698_p6 = por %p697_p5, %p696_p9 }
  0xa7   : > { %p694_p8 = pneg %p693_p7 }
  0xa8   : > { %p700_p0 = por %p699_p12, %p698_p6 }
  0xaa   : > { %p701_p2 = pnand %p700_p0, %p694_p8 }
  0xac   : > { %704 = shalt.err (!%p701_p2)
}
  0xad   : > { %508 = dma.vmem_to_hbm [thread:$0]  (%p1050_p13), %s987_s2, 128, %s985_s5, %s395_s9  }
  0xae PF: > { %s420_s25 = sand.u32 1, %s752_s6   ;;  %p1051_p4 = scmp.ne.s32.totalorder %s1046_s23, 0 }
  0xaf   : > { %p1052_p10 = scmp.ge.s32.totalorder %s780_s13, 2  ;;  %s421_s26 = scalar_lea.sflag [#allocation4], %s420_s25 }
  0xb1   : > { %p515_p11 = pnand %p1052_p10, %p1051_p4 }
  0xb3   : > { %746 = dma.done.wait (!%p515_p11), %s421_s26, 128  }
  0xb4   : > { %748 = vsyncadd (!%p515_p11), %s421_s26, 4294967168  ;;  %s17_s13 = sadd.s32 1, %s780_s13   ;;  %s1053_s6 = smov %s756_s7 }
  0xb5   : > { %p14_p1 = scmp.ge.s32.totalorder %s17_s13, 4   ;;  %s1054_s7 = smov %s760_s8 }
  0xb6   : > { %s1055_s8 = smov %s854_s21  ;;  %s1056_s9 = smov %s768_s10 }
  0xb7   : > { %s1028_s10 = smov 0   ;;  %s1057_s11 = smov %s776_s12 }
  0xb8   : > { %s1058_s12 = smov %s1060_s16  ;;  %16 = sbr.rel (!%p14_p1) target bundleno = 7 (0x7), region = 74 }
  0xbf   :  { %426 = vsyncpa [#allocation3], 1 }
  0xc0   :  { %428 = vsyncpa [#allocation3 + $0x1], 1 }
  0xc1   :  { %429 = vsyncpa [#allocation4], 1 }
  0xc2   :  { %431 = vsyncpa [#allocation4 + $0x1], 1 }

</bundles_post_ra>
